<compile_context>
chip_gen: v6e
topology: v6e:2x2x1
jax: 0.10.0
libtpu: 0.0.40
codegen_flags: <defaults>
</compile_context>

<pallas_src>
import numpy as np
import jax
import jax.numpy as jnp
from jax.experimental import pallas as pl
from jax.experimental.pallas import tpu as pltpu


def _round_up(x, m):
    return ((x + m - 1) // m) * m


# ---------------------------------------------------------------------------
# Layer 1 (in_dim == 1): aggregation is an (N,N)x(N,1) matvec; weight / bias /
# relu / next-layer source norm applied in the epilogue as cheap broadcasts.
# Output x2 = relu(h1) * D_src^{-1/2}, stored bf16 (it is layer 2's MXU rhs).
# ---------------------------------------------------------------------------
def _layer1_kernel(adj_ref, x1_ref, ndst_ref, nsrc_ref, w1_ref, b1_ref,
                   x2_ref, acc_ref):
    k = pl.program_id(1)

    @pl.when(k == 0)
    def _():
        acc_ref[...] = jnp.zeros_like(acc_ref)

    a = adj_ref[...].astype(jnp.bfloat16)          # int8 {0,1} -> bf16 (exact)
    x = x1_ref[...].astype(jnp.bfloat16)
    acc_ref[...] += jnp.dot(a, x, preferred_element_type=jnp.float32)  # (tm,1)

    @pl.when(k == pl.num_programs(1) - 1)
    def _():
        u = acc_ref[...] * ndst_ref[...]                         # (tm, 1) f32
        h1 = jnp.maximum(u * w1_ref[...] + b1_ref[...], 0.0)     # (tm, Hp)
        x2_ref[...] = (h1 * nsrc_ref[...]).astype(x2_ref.dtype)  # pre-scaled


# ---------------------------------------------------------------------------
# Layer 2 + fused mean-pool partials: acc += adj_bf16 @ x2_bf16 (f32 acc);
# epilogue applies dst-norm, weight, bias, relu and writes per-dst-tile pooled
# partials (membership_tile @ h2_tile) -> no (N,H) HBM round trip.
# ---------------------------------------------------------------------------
def _layer2_pool_kernel(adj_ref, x2_ref, ndst_ref, w2_ref, b2_ref, m_ref,
                        pooled_ref, acc_ref):
    k = pl.program_id(1)

    @pl.when(k == 0)
    def _():
        acc_ref[...] = jnp.zeros_like(acc_ref)

    a = adj_ref[...].astype(jnp.bfloat16)
    acc_ref[...] += jnp.dot(a, x2_ref[...],
                            preferred_element_type=jnp.float32)  # (tm, Hp)

    @pl.when(k == pl.num_programs(1) - 1)
    def _():
        agg = acc_ref[...] * ndst_ref[...]
        h2 = jnp.maximum(
            jnp.dot(agg, w2_ref[...], preferred_element_type=jnp.float32)
            + b2_ref[...], 0.0)                                   # (tm, Hp)
        pooled_ref[0] = jnp.dot(m_ref[...], h2,
                                preferred_element_type=jnp.float32)  # (G, Hp)


# ---------------------------------------------------------------------------
# Head: reduce pooled partials over dst tiles + linear classifier (tiny).
# ---------------------------------------------------------------------------
def _head_kernel(pooled_ref, wc_ref, bc_ref, out_ref):
    hg = jnp.sum(pooled_ref[...], axis=0)                         # (G, Hp)
    out_ref[...] = (jnp.dot(hg, wc_ref[...],
                            preferred_element_type=jnp.float32) + bc_ref[...])


def classifier_forward(adj_i8, in_deg, out_deg, membership, params, *,
                       tile=2048):
    """adj_i8: (N,N) {0,1} Adj[dst,src]; in_deg/out_deg: (N,) structural
    degrees; membership: (G,N) mean-pool matrix."""
    w1, b1, w2, b2, wc, bc = params
    N = adj_i8.shape[0]
    G = membership.shape[0]
    H = w1.shape[-1]
    C = wc.shape[-1]
    Hp = _round_up(max(H, 128), 128)           # lane-dense hidden dim

    # Tile selection + N padding (always 128-aligned; never full-array fallback).
    t = min(_round_up(tile, 128), _round_up(N, 128))
    Np = _round_up(N, t)
    nI = Np // t
    nK = Np // t

    adj_i8 = adj_i8.astype(jnp.int8)
    in_deg = jnp.asarray(in_deg, jnp.float32).reshape(N, 1)
    out_deg = jnp.asarray(out_deg, jnp.float32).reshape(N, 1)
    membership = jnp.asarray(membership, jnp.float32)
    if Np != N:
        p = Np - N
        adj_i8 = jnp.pad(adj_i8, ((0, p), (0, p)))
        in_deg = jnp.pad(in_deg, ((0, p), (0, 0)))
        out_deg = jnp.pad(out_deg, ((0, p), (0, 0)))
        membership = jnp.pad(membership, ((0, 0), (0, p)))

    # Tiny N-element vector glue (norms + layer-1 source feature).
    ndst = 1.0 / jnp.sqrt(jnp.maximum(in_deg, 1.0))      # D_dst^{-1/2}, (Np,1)
    nsrc = 1.0 / jnp.sqrt(jnp.maximum(out_deg, 1.0))     # D_src^{-1/2}, (Np,1)
    x1 = in_deg * nsrc                                   # h0 * D_src^{-1/2}

    # Zero-pad parameters to Hp (numerically a no-op; lane-dense epilogues).
    w1p = jnp.zeros((1, Hp), jnp.float32).at[:, :H].set(w1.reshape(1, H))
    b1p = jnp.zeros((1, Hp), jnp.float32).at[:, :H].set(b1.reshape(1, H))
    w2p = jnp.zeros((Hp, Hp), jnp.float32).at[:H, :H].set(w2)
    b2p = jnp.zeros((1, Hp), jnp.float32).at[:, :H].set(b2.reshape(1, H))
    wcp = jnp.zeros((Hp, C), jnp.float32).at[:H, :].set(wc)
    bcp = bc.reshape(1, C).astype(jnp.float32)

    vmem_limit = 48 * 1024 * 1024          # <= v7x 64 MiB physical VMEM
    cparams = pltpu.CompilerParams(
        dimension_semantics=("parallel", "arbitrary"),
        vmem_limit_bytes=vmem_limit)

    # ---- Layer 1: aggregation matvec + epilogue -> x2 (bf16, Hp-padded) ----
    x2 = pl.pallas_call(
        _layer1_kernel,
        out_shape=jax.ShapeDtypeStruct((Np, Hp), jnp.bfloat16),
        grid=(nI, nK),
        in_specs=[pl.BlockSpec((t, t), lambda i, k: (i, k)),    # adj (int8)
                  pl.BlockSpec((t, 1), lambda i, k: (k, 0)),    # x1 (src)
                  pl.BlockSpec((t, 1), lambda i, k: (i, 0)),    # ndst (dst)
                  pl.BlockSpec((t, 1), lambda i, k: (i, 0)),    # nsrc (dst)
                  pl.BlockSpec((1, Hp), lambda i, k: (0, 0)),   # w1
                  pl.BlockSpec((1, Hp), lambda i, k: (0, 0))],  # b1
        out_specs=pl.BlockSpec((t, Hp), lambda i, k: (i, 0)),
        scratch_shapes=[pltpu.VMEM((t, 1), jnp.float32)],
        compiler_params=cparams,
    )(adj_i8, x1, ndst, nsrc, w1p, b1p)

    # ---- Layer 2 + fused mean-pool partials --------------------------------
    pooled = pl.pallas_call(
        _layer2_pool_kernel,
        out_shape=jax.ShapeDtypeStruct((nI, G, Hp), jnp.float32),
        grid=(nI, nK),
        in_specs=[pl.BlockSpec((t, t), lambda i, k: (i, k)),    # adj (int8)
                  pl.BlockSpec((t, Hp), lambda i, k: (k, 0)),   # x2 (bf16)
                  pl.BlockSpec((t, 1), lambda i, k: (i, 0)),    # ndst
                  pl.BlockSpec((Hp, Hp), lambda i, k: (0, 0)),  # w2
                  pl.BlockSpec((1, Hp), lambda i, k: (0, 0)),   # b2
                  pl.BlockSpec((G, t), lambda i, k: (0, i))],   # membership
        out_specs=pl.BlockSpec((1, G, Hp), lambda i, k: (i, 0, 0)),
        scratch_shapes=[pltpu.VMEM((t, Hp), jnp.float32)],
        compiler_params=cparams,
    )(adj_i8, x2, ndst, w2p, b2p, membership)

    # ---- Head: reduce partials + classify (tiny, whole-array VMEM) ---------
    vmem = pl.BlockSpec(memory_space=pltpu.MemorySpace.VMEM)
    logits = pl.pallas_call(
        _head_kernel,
        out_shape=jax.ShapeDtypeStruct((G, C), jnp.float32),
        in_specs=[vmem, vmem, vmem],
        out_specs=vmem,
    )(pooled, wcp, bcp)
    return logits


if __name__ == "__main__":
    # Batch of G=16 directed graphs with 16 nodes each (N=256), block-diagonal.
    n_per, G = 16, 16
    N = n_per * G
    in_dim, hidden_dim, n_classes = 1, 32, 3

    # Graph metadata: deduped edge set -> adjacency (int8) AND structural degrees.
    edges = set()
    for g in range(G):
        off = g * n_per
        for i in range(n_per):                       # directed cycle
            edges.add((off + i, off + (i + 1) % n_per))
        edges.add((off + 3, off))                    # extra edges -> irregular
        edges.add((off + 5, off + 2))
        edges.add((off + (g % n_per), off + 7))      # vary degrees across graphs
    src = np.array([e[0] for e in sorted(edges)], dtype=np.int64)
    dst = np.array([e[1] for e in sorted(edges)], dtype=np.int64)

    A = np.zeros((N, N), dtype=np.int8)              # A[dst, src]
    A[dst, src] = 1
    in_deg_np = np.zeros(N, np.float32)
    out_deg_np = np.zeros(N, np.float32)
    np.add.at(in_deg_np, dst, 1.0)
    np.add.at(out_deg_np, src, 1.0)

    M = np.zeros((G, N), dtype=np.float32)
    for g in range(G):
        M[g, g * n_per:(g + 1) * n_per] = 1.0 / n_per

    adj = jnp.asarray(A)
    in_deg = jnp.asarray(in_deg_np)
    out_deg = jnp.asarray(out_deg_np)
    membership = jnp.asarray(M)

    # Deterministic synthetic parameters (shapes from Classifier.__init__).
    k1, k2, k3 = jax.random.split(jax.random.PRNGKey(0), 3)
    w1 = jax.random.normal(k1, (in_dim, hidden_dim), jnp.float32) * 0.1
    b1 = jnp.full((1, hidden_dim), 0.02, jnp.float32)
    w2 = jax.random.normal(k2, (hidden_dim, hidden_dim), jnp.float32) * 0.1
    b2 = jnp.full((1, hidden_dim), 0.01, jnp.float32)
    wc = jax.random.normal(k3, (hidden_dim, n_classes), jnp.float32) * 0.1
    bc = jnp.zeros((1, n_classes), jnp.float32)
    params = (w1, b1, w2, b2, wc, bc)

    # tile=128 keeps the demo grid at 2x2 so the accumulate / pl.when paths
    # are exercised; realistic batched N should use the 2048 default.
    logits = jax.block_until_ready(
        classifier_forward(adj, in_deg, out_deg, membership, params, tile=128))

    # Pure-JAX f32 reference of the same math (DGL GraphConv, norm='both').
    adjf = jnp.asarray(A, jnp.float32)
    ind = in_deg.reshape(N, 1)
    outd = out_deg.reshape(N, 1)
    ndst = 1.0 / jnp.sqrt(jnp.maximum(ind, 1.0))
    nsrc = 1.0 / jnp.sqrt(jnp.maximum(outd, 1.0))
    h = ind
    h = jnp.maximum(((adjf @ (h * nsrc)) * ndst) @ w1 + b1, 0.0)
    h = jnp.maximum(((adjf @ (h * nsrc)) * ndst) @ w2 + b2, 0.0)
    ref = (membership @ h) @ wc + bc

    assert logits.shape == (G, n_classes)
    # bf16 feature path (adj operand stays exact): slightly looser tolerance.
    assert jnp.allclose(logits, ref, rtol=2e-2, atol=5e-3), (
        float(jnp.max(jnp.abs(logits - ref))))
    print("KERNEL_OK")
</pallas_src>

<mosaic_0001>
module attributes {stable_mosaic.version = 11 : i64} {
  func.func @_layer1_kernel(%arg0: i32, %arg1: i32, %arg2: memref<128x128xi8, #tpu.memory_space<vmem>>, %arg3: memref<128x1xf32, #tpu.memory_space<vmem>>, %arg4: memref<128x1xf32, #tpu.memory_space<vmem>>, %arg5: memref<128x1xf32, #tpu.memory_space<vmem>>, %arg6: memref<1x128xf32, #tpu.memory_space<vmem>>, %arg7: memref<1x128xf32, #tpu.memory_space<vmem>>, %arg8: memref<128x128xbf16, #tpu.memory_space<vmem>>, %arg9: memref<128x1xf32, #tpu.memory_space<vmem>>) attributes {dimension_semantics = [#tpu.dimension_semantics<parallel>, #tpu.dimension_semantics<arbitrary>], iteration_bounds = array<i64: 2, 2>, scalar_prefetch = 0 : i64, scratch_operands = 1 : i64, tpu.core_type = #tpu.core_type<tc>, window_params = [{transform_indices = @transform_0, window_bounds = array<i64: 128, 128>}, {transform_indices = @transform_1, window_bounds = array<i64: 128, 1>}, {transform_indices = @transform_2, window_bounds = array<i64: 128, 1>}, {transform_indices = @transform_3, window_bounds = array<i64: 128, 1>}, {pipeline_mode = #tpu.pipeline_mode<synchronous>, transform_indices = @transform_4, window_bounds = array<i64: 1, 128>}, {pipeline_mode = #tpu.pipeline_mode<synchronous>, transform_indices = @transform_5, window_bounds = array<i64: 1, 128>}, {transform_indices = @transform_6, window_bounds = array<i64: 128, 128>}]} {
    %c0_i32 = arith.constant 0 : i32
    %0 = arith.cmpi eq, %arg1, %c0_i32 : i32
    %1 = arith.extui %0 : i1 to i32
    %c0_i32_0 = arith.constant 0 : i32
    %2 = arith.cmpi ne, %1, %c0_i32_0 : i32
    scf.if %2 {
      %cst_9 = arith.constant 0.000000e+00 : f32
      %14 = vector.broadcast %cst_9 : f32 to vector<128x1xf32>
      %c0_10 = arith.constant 0 : index
      %c0_11 = arith.constant 0 : index
      %15 = vector.load %arg9[%c0_10, %c0_11] : memref<128x1xf32, #tpu.memory_space<vmem>>, vector<128x1xf32>
      tpu.vector_store %arg9[%c0_10, %c0_11], %14 {strides = array<i32>} : memref<128x1xf32, #tpu.memory_space<vmem>>, vector<128x1xf32>,
    } else {
    }
    %c0 = arith.constant 0 : index
    %c0_1 = arith.constant 0 : index
    %3 = vector.load %arg2[%c0, %c0_1] : memref<128x128xi8, #tpu.memory_space<vmem>>, vector<128x128xi8>
    %4 = arith.sitofp %3 : vector<128x128xi8> to vector<128x128xbf16>
    %c0_2 = arith.constant 0 : index
    %c0_3 = arith.constant 0 : index
    %5 = vector.load %arg3[%c0_2, %c0_3] : memref<128x1xf32, #tpu.memory_space<vmem>>, vector<128x1xf32>
    %6 = arith.truncf %5 : vector<128x1xf32> to vector<128x1xbf16>
    %c0_4 = arith.constant 0 : index
    %c0_5 = arith.constant 0 : index
    %7 = vector.load %arg9[%c0_4, %c0_5] : memref<128x1xf32, #tpu.memory_space<vmem>>, vector<128x1xf32>
    %cst = arith.constant dense<0.000000e+00> : vector<128x1xf32>
    %8 = tpu.matmul %4, %6, %cst {dimension_numbers = #tpu.dot_dimension_numbers<[1], [0], [0], [1], [0, 0, 1, 1], [], []>} : vector<128x128xbf16>, vector<128x1xbf16>, vector<128x1xf32> -> vector<128x1xf32>
    %9 = arith.addf %7, %8 : vector<128x1xf32>
    %c0_6 = arith.constant 0 : index
    %c0_7 = arith.constant 0 : index
    %10 = vector.load %arg9[%c0_6, %c0_7] : memref<128x1xf32, #tpu.memory_space<vmem>>, vector<128x1xf32>
    tpu.vector_store %arg9[%c0_6, %c0_7], %9 {strides = array<i32>} : memref<128x1xf32, #tpu.memory_space<vmem>>, vector<128x1xf32>,
    %c1_i32 = arith.constant 1 : i32
    %11 = arith.cmpi eq, %arg1, %c1_i32 : i32
    %12 = arith.extui %11 : i1 to i32
    %c0_i32_8 = arith.constant 0 : i32
    %13 = arith.cmpi ne, %12, %c0_i32_8 : i32
    scf.if %13 {
      %c0_9 = arith.constant 0 : index
      %c0_10 = arith.constant 0 : index
      %14 = vector.load %arg9[%c0_9, %c0_10] : memref<128x1xf32, #tpu.memory_space<vmem>>, vector<128x1xf32>
      %c0_11 = arith.constant 0 : index
      %c0_12 = arith.constant 0 : index
      %15 = vector.load %arg4[%c0_11, %c0_12] : memref<128x1xf32, #tpu.memory_space<vmem>>, vector<128x1xf32>
      %16 = arith.mulf %14, %15 : vector<128x1xf32>
      %c0_13 = arith.constant 0 : index
      %c0_14 = arith.constant 0 : index
      %17 = vector.load %arg6[%c0_13, %c0_14] : memref<1x128xf32, #tpu.memory_space<vmem>>, vector<1x128xf32>
      %18 = vector.broadcast %16 : vector<128x1xf32> to vector<128x128xf32>
      %19 = vector.broadcast %17 : vector<1x128xf32> to vector<128x128xf32>
      %20 = arith.mulf %18, %19 : vector<128x128xf32>
      %c0_15 = arith.constant 0 : index
      %c0_16 = arith.constant 0 : index
      %21 = vector.load %arg7[%c0_15, %c0_16] : memref<1x128xf32, #tpu.memory_space<vmem>>, vector<1x128xf32>
      %22 = vector.broadcast %21 : vector<1x128xf32> to vector<128x128xf32>
      %23 = arith.addf %20, %22 : vector<128x128xf32>
      %cst_17 = arith.constant 0.000000e+00 : f32
      %24 = vector.broadcast %cst_17 : f32 to vector<128x128xf32>
      %25 = arith.maximumf %23, %24 : vector<128x128xf32>
      %c0_18 = arith.constant 0 : index
      %c0_19 = arith.constant 0 : index
      %26 = vector.load %arg5[%c0_18, %c0_19] : memref<128x1xf32, #tpu.memory_space<vmem>>, vector<128x1xf32>
      %27 = vector.broadcast %26 : vector<128x1xf32> to vector<128x128xf32>
      %28 = arith.mulf %25, %27 : vector<128x128xf32>
      %29 = arith.truncf %28 : vector<128x128xf32> to vector<128x128xbf16>
      %c0_20 = arith.constant 0 : index
      %c0_21 = arith.constant 0 : index
      %30 = vector.load %arg8[%c0_20, %c0_21] : memref<128x128xbf16, #tpu.memory_space<vmem>>, vector<128x128xbf16>
      tpu.vector_store %arg8[%c0_20, %c0_21], %29 {strides = array<i32>} : memref<128x128xbf16, #tpu.memory_space<vmem>>, vector<128x128xbf16>,
    } else {
    }
    return
  }
  func.func @transform_0(%arg0: i32, %arg1: i32) -> (i32, i32) {
    %c0_i32 = arith.constant 0 : i32
    return %arg0, %arg1 : i32, i32
  }
  func.func @transform_1(%arg0: i32, %arg1: i32) -> (i32, i32) {
    %c0_i32 = arith.constant 0 : i32
    %c0_i32_0 = arith.constant 0 : i32
    return %arg1, %c0_i32 : i32, i32
  }
  func.func @transform_2(%arg0: i32, %arg1: i32) -> (i32, i32) {
    %c0_i32 = arith.constant 0 : i32
    %c0_i32_0 = arith.constant 0 : i32
    return %arg0, %c0_i32 : i32, i32
  }
  func.func @transform_3(%arg0: i32, %arg1: i32) -> (i32, i32) {
    %c0_i32 = arith.constant 0 : i32
    %c0_i32_0 = arith.constant 0 : i32
    return %arg0, %c0_i32 : i32, i32
  }
  func.func @transform_4(%arg0: i32, %arg1: i32) -> (i32, i32) {
    %c0_i32 = arith.constant 0 : i32
    %c0_i32_0 = arith.constant 0 : i32
    %c0_i32_1 = arith.constant 0 : i32
    return %c0_i32, %c0_i32_0 : i32, i32
  }
  func.func @transform_5(%arg0: i32, %arg1: i32) -> (i32, i32) {
    %c0_i32 = arith.constant 0 : i32
    %c0_i32_0 = arith.constant 0 : i32
    %c0_i32_1 = arith.constant 0 : i32
    return %c0_i32, %c0_i32_0 : i32, i32
  }
  func.func @transform_6(%arg0: i32, %arg1: i32) -> (i32, i32) {
    %c0_i32 = arith.constant 0 : i32
    %c0_i32_0 = arith.constant 0 : i32
    return %arg0, %c0_i32 : i32, i32
  }
}

</mosaic_0001>

<bundles_post_ra>
// kernel: tpu_custom_call.1
= control target key start
LH: loop header
LB: loop body
LE: loop exit
PB: predicated region body
PF: predicated region fallthrough
CT: control target
= control target key end

     0   :  { %s1850_s0 = inlined_call_operand.vmem [shape: s8[256,256], index: 0, kind: input, shape index: {}]   ;;  %s1851_s1 = inlined_call_operand.vmem [shape: f32[256,1], index: 1, kind: input, shape index: {}]   ;;  %s1852_s2 = inlined_call_operand.vmem [shape: f32[256,1], index: 2, kind: input, shape index: {}]   ;;  %s1853_s3 = inlined_call_operand.vmem [shape: f32[256,1], index: 3, kind: input, shape index: {}]   ;;  %s1854_s4 = inlined_call_operand.vmem [shape: f32[1,128], index: 4, kind: input, shape index: {}]   ;;  %s1855_s5 = inlined_call_operand.vmem [shape: f32[1,128], index: 5, kind: input, shape index: {}]   ;;  %s1856_s6 = inlined_call_operand.hbm [shape: bf16[256,128], index: 6, kind: output, shape index: {}]  }
   0x1   :  { %1863 = sst [smem:[#allocation14_spill]] %s1850_s0 }
   0x2   :  { %11 = vsyncpa [#allocation5], 0 }
   0x3   :  { %13 = vsyncpa [#allocation5 + $0x1], 0  ;;  %s1517_s21 = smov 0   ;;  %s1519_s22 = smov 0  }
   0x4   :  { %s1521_s23 = smov 0   ;;  %s1523_s24 = smov 0  }
   0x5   :  { %s1525_s25 = smov 0   ;;  %s1527_s26 = smov 0  }
   0x6   :  { %s1529_s27 = smov 0   ;;  %s1531_s28 = smov 0  }
   0x7   :  { %s1533_s29 = smov 0   ;;  %s1535_s30 = smov 0  }
   0x8 LB: > { %1864 = sst [smem:[#allocation7_spill]] %s1455_s25  ;;  %s1103_s7 = sadd.s32 4294967295, %s1475_s30   ;;  %s1475_s30 = sphi %s1535_s30, %s19_s30   ;;  %s1471_s29 = sphi %s1533_s29, %s1882_s29   ;;  %s1467_s28 = sphi %s1531_s28, %s1881_s28   ;;  %s1463_s27 = sphi %s1529_s27, %s1880_s27   ;;  %s1459_s26 = sphi %s1527_s26, %s1879_s26   ;;  %s1455_s25 = sphi %s1525_s25, %s1878_s25   ;;  %s1451_s24 = sphi %s1523_s24, %s1877_s24   ;;  %s1447_s23 = sphi %s1521_s23, %s1885_s23   ;;  %s1443_s22 = sphi %s1519_s22, %s1884_s22   ;;  %s1439_s21 = sphi %s1517_s21, %s1883_s21  }
   0x9   : > { %1865 = sst [smem:[#allocation8_spill]] %s1467_s28  ;;  %s1104_s8 = sadd.s32 4294967294, %s1475_s30  }
   0xa   : > { %1866 = sst [smem:[#allocation9_spill]] %s1471_s29  ;;  %s28_s9 = sadd.s32 1, %s1467_s28 }
   0xb   : > { %s31_s10 = sadd.s32 1, %s1471_s29  ;;  %p29_p0 = scmp.ge.s32.totalorder %s28_s9, 2 }
   0xc   : > { %s40_s11 = sadd.s32 1, %s1455_s25  ;;  %p47_p1 = scmp.ne.s32.totalorder %s1455_s25, %s1451_s24 }
   0xd   : > { %p48_p2 = scmp.eq.s32.totalorder %s1475_s30, 0  ;;  %s1887_s9 = smov (%p29_p0, %s28_s9), 0 }
   0xe   : > { %1867 = sst [smem:[#allocation10_spill]] %s1887_s9  ;;  %s1889_s10 = smov (!%p29_p0, %s31_s10), %s1471_s29 }
   0xf   : > { %s36_s12 = ssub.s32 %s1467_s28, %s1887_s9  ;;  %p1580_p3 = por %p48_p2, %p47_p1 }
  0x10   : > { %p33_p4 = scmp.ge.s32.totalorder %s1889_s10, 2  ;;  %s186_s14 = sadd.s32 1, %s1447_s23 }
  0x11   : > { %p196_p5 = scmp.ne.s32.totalorder %s1447_s23, %s1443_s22  ;;  %p197_p6 = scmp.eq.s32.totalorder %s1103_s7, 3 }
  0x12   : > { %s1891_s10 = smov (%p33_p4, %s1889_s10), 0  ;;  %p202_p8 = scmp.ne.s32.totalorder %s1443_s22, %s1439_s21 }
  0x13   : > { %1869 = sst [smem:[#allocation11_spill]] %s1891_s10  ;;  %p1589_p7 = por %p197_p6, %p196_p5 }
  0x14   : > { %s35_s16 = ssub.s32 %s1471_s29, %s1891_s10  ;;  %p203_p9 = scmp.eq.s32.totalorder %s1104_s8, 3 }
  0x15   : > { %s37_s17 = sor.u32 %s36_s12, %s35_s16  ;;  %p184_p10 = scmp.eq.s32.totalorder %s35_s16, 0 }
  0x16   : > { %p38_p11 = scmp.eq.s32.totalorder %s37_s17, 0  ;;  %p1597_p12 = por %p203_p9, %p202_p8 }
  0x17   : > { %s1602_s19 = scalar_select %p184_p10, %s1447_s23, %s186_s14  }
  0x18   : > { %s1605_s20 = scalar_select %p38_p11, %s1455_s25, %s40_s11  }
  0x19   : > { %1872 = sst [smem:[#allocation12_spill]] %s1602_s19  ;;  %p1106_p13 = scmp.ge.s32.totalorder %s1475_s30, 4 }
  0x1a   : > { %1873 = sst [smem:[#allocation13_spill]] %s1605_s20 }
  0x1b   : > { %225 = sbr.rel (%p1106_p13) target bundleno = 44 (0x2c), region = 24 }
  0x20   : > { %228 = sbr.rel (!%p1580_p3) target bundleno = 44 (0x2c), region = 28  ;;  %s230_s7 = sand.u32 (%p1580_p3), 1, %s1455_s25  }
  0x21   : > { %s1145_s8 = sshll.u32 (%p1580_p3), %s1471_s29, 3  ;;  %s1107_s12 = sshll.u32 (%p1580_p3), %s230_s7, 5 }
  0x22   : > { %s235_s16 = sadd.s32 (%p1580_p3), %s1467_s28, %s1145_s8  ;;  %s1874_s0 = sld [smem:[#allocation14_spill]] (%p1580_p3) }
  0x23   : > { %s1110_s17 = sshll.u32 (%p1580_p3), %s235_s16, 3  ;;  %s232_s11 = scalar_lea.vmem (%p1580_p3), [#allocation3], %s1107_s12 }
  0x28   : > { %s237_s14 = scalar_lea.vmem %s1874_s0, %s1110_s17 }
  0x29   : > { %v272_v0 = vld [vmem:[%s237_s14] sm:$0xff]  ;;  %v274_v1 = vld [vmem:[%s237_s14 + $0x10] sm:$0xff] }
  0x2a   : > { %v276_v2 = vld [vmem:[%s237_s14 + $0x20] sm:$0xff]  ;;  %273 = vst [vmem:[%s232_s11] sm:$0xff] %v272_v0  ;;  %275 = vst [vmem:[%s232_s11 + $0x8] sm:$0xff] %v274_v1  ;;  %v278_v3 = vld [vmem:[%s237_s14 + $0x30] sm:$0xff] }
  0x2b   : > { %277 = vst [vmem:[%s232_s11 + $0x10] sm:$0xff] %v276_v2  ;;  %279 = vst [vmem:[%s232_s11 + $0x18] sm:$0xff] %v278_v3 }
  0x2c PF: > { %p1111_p0 = scmp.ge.s32.totalorder %s1475_s30, 1  ;;  %p311_p1 = scmp.lt.s32.totalorder %s1475_s30, 5 }
  0x2e   : > { %p312_p2 = pnand %p1111_p0, %p311_p1 }
  0x2f   : > { %s318_s9 = sand.u32 (!%p312_p2), 1, %s1451_s24   ;;  %s1861_s10 = sand.u32 (!%p312_p2), 1, %s1443_s22  }
  0x30   : > { %315 = sbr.rel (%p312_p2) target bundleno = 533 (0x215), region = 78  ;;  %s1112_s13 = sshll.u32 (!%p312_p2), %s318_s9, 5 }
  0x31   : > { %s1113_s7 = sshll.u32 (!%p312_p2), %s1861_s10, 6  ;;  %s1114_s8 = sshll.u32 (!%p312_p2), %s1459_s26, 4 }
  0x32   : > { %s1116_s12 = sshll.u32 (!%p312_p2), %s1463_s27, 4  ;;  %p364_p3 = scmp.lt.s32.totalorder (!%p312_p2), %s1114_s8, 31 }
  0x33   : > { %p370_p4 = scmp.lt.s32.totalorder (!%p312_p2), %s1116_s12, 31  ;;  %s1639_s25 = scalar_lea.vmem (!%p312_p2), [#allocation3], %s1112_s13 }
  0x34   : > { %s1641_s19 = scalar_lea.vmem (!%p312_p2), [#allocation4], %s1113_s7  ;;  %p1120_p5 = scmp.ne.s32.totalorder (!%p312_p2), %s1459_s26, 0 }
  0x35   : > { %s1893_s8 = smov (!%p364_p3, %s1114_s8), 31  ;;  %s1895_s12 = smov (!%p370_p4, %s1116_s12), 31 }
  0x36   : > { %s1115_s16 = sshll.u32 %s1893_s8, 3  ;;  %s1117_s0 = sshll.u32 %s1895_s12, 3 }
  0x37   : > { %s1627_s11 = scalar_lea.vmem %s1851_s1, %s1115_s16  ;;  %s1632_s24 = scalar_lea.vmem %s1852_s2, %s1117_s0 }
  0x38   : > { %s1637_s20 = scalar_lea.vmem %s1853_s3, %s1117_s0  ;;  %386 = sbr.rel (%p1120_p5) target bundleno = 70 (0x46), region = 86 }
  0x3d   : > { %vm387_vm0 = vcmask 7168   ;;  %v1477_v4 = vmov 0.0  }
  0x3e   : > { %388 = vst.msk [vmem:[#allocation2] sm:$0xff] %vm387_vm0, %v1477_v4  ;;  %389 = vst.msk [vmem:[#allocation2 + $0x8] sm:$0xff] %vm387_vm0, %v1477_v4 }
  0x3f   : > { %390 = vst.msk [vmem:[#allocation2 + $0x10] sm:$0xff] %vm387_vm0, %v1477_v4  ;;  %391 = vst.msk [vmem:[#allocation2 + $0x18] sm:$0xff] %vm387_vm0, %v1477_v4 }
  0x40   : > { %392 = vst.msk [vmem:[#allocation2 + $0x20] sm:$0xff] %vm387_vm0, %v1477_v4  ;;  %393 = vst.msk [vmem:[#allocation2 + $0x28] sm:$0xff] %vm387_vm0, %v1477_v4 }
  0x41   : > { %394 = vst.msk [vmem:[#allocation2 + $0x30] sm:$0xff] %vm387_vm0, %v1477_v4  ;;  %395 = vst.msk [vmem:[#allocation2 + $0x38] sm:$0xff] %vm387_vm0, %v1477_v4 }
  0x42   : > { %396 = vst.msk [vmem:[#allocation2 + $0x40] sm:$0xff] %vm387_vm0, %v1477_v4  ;;  %397 = vst.msk [vmem:[#allocation2 + $0x48] sm:$0xff] %vm387_vm0, %v1477_v4 }
  0x43   : > { %398 = vst.msk [vmem:[#allocation2 + $0x50] sm:$0xff] %vm387_vm0, %v1477_v4  ;;  %399 = vst.msk [vmem:[#allocation2 + $0x58] sm:$0xff] %vm387_vm0, %v1477_v4 }
  0x44   : > { %400 = vst.msk [vmem:[#allocation2 + $0x60] sm:$0xff] %vm387_vm0, %v1477_v4  ;;  %401 = vst.msk [vmem:[#allocation2 + $0x68] sm:$0xff] %vm387_vm0, %v1477_v4 }
  0x45   : > { %402 = vst.msk [vmem:[#allocation2 + $0x70] sm:$0xff] %vm387_vm0, %v1477_v4  ;;  %403 = vst.msk [vmem:[#allocation2 + $0x78] sm:$0xff] %vm387_vm0, %v1477_v4 }
  0x46 PF: > { %v430_v5 = vld [vmem:[%s1627_s11 + $0x70] sm:$0xff]  ;;  %v431_v6 = vld [vmem:[%s1627_s11 + $0x78] sm:$0xff]  ;;  %v428_v7 = vld [vmem:[%s1627_s11 + $0x60] sm:$0xff]  ;;  %vm569_vm1 = vcmask 7168   ;;  %p1121_p6 = scmp.ne.s32.totalorder %s1459_s26, 1 }
  0x47   : > { %v439_v8 = vpack.c.bf16 %v431_v6, %v430_v5  ;;  %v429_v9 = vld [vmem:[%s1627_s11 + $0x68] sm:$0xff]  ;;  %v426_v11 = vld [vmem:[%s1627_s11 + $0x50] sm:$0xff]  ;;  %v427_v12 = vld [vmem:[%s1627_s11 + $0x58] sm:$0xff] }
  0x48   : > { %v438_v10 = vpack.c.bf16 %v429_v9, %v428_v7  ;;  %v437_v13 = vpack.c.bf16 %v427_v12, %v426_v11  ;;  %v404_v14 = vld [vmem:[%s1639_s25] sm:$0xff]  ;;  %v406_v15 = vld [vmem:[%s1639_s25 + $0x10] sm:$0xff]  ;;  %v425_v17 = vld [vmem:[%s1627_s11 + $0x48] sm:$0xff] }
  0x49   : > { %1226 = vmatprep.subr.bf16.mxu0 %v439_v8  ;;  %1258 = vmatprep.subr.bf16.mxu1 %v439_v8  ;;  %v424_v16 = vld [vmem:[%s1627_s11 + $0x40] sm:$0xff]  ;;  %v408_v18 = vunpack.c.l.s8.bf16 %v404_v14  ;;  %v412_v19 = vunpack.c.l.s8.bf16 %v406_v15  ;;  %v422_v21 = vld [vmem:[%s1627_s11 + $0x30] sm:$0xff]  ;;  %v423_v22 = vld [vmem:[%s1627_s11 + $0x38] sm:$0xff]  ;;  %v409_v35 = vunpack.c.h.s8.bf16 %v404_v14  ;;  %v413_v36 = vunpack.c.h.s8.bf16 %v406_v15 }
  0x4a   : > { %1227 = vmatpush3.bf16.msra.mxu0 %v439_v8  ;;  %1266 = vmatpush3.bf16.msra.mxu1 %v439_v8  ;;  %v436_v20 = vpack.c.bf16 %v425_v17, %v424_v16  ;;  %v435_v23 = vpack.c.bf16 %v423_v22, %v422_v21  ;;  %v420_v24 = vld [vmem:[%s1627_s11 + $0x20] sm:$0xff]  ;;  %v421_v25 = vld [vmem:[%s1627_s11 + $0x28] sm:$0xff]  ;;  %v418_v27 = vld [vmem:[%s1627_s11 + $0x10] sm:$0xff] }
  0x4b   : > { %1228 = vmatprep.subr.bf16.mxu0 %v438_v10  ;;  %1259 = vmatprep.subr.bf16.mxu1 %v438_v10  ;;  %v434_v26 = vpack.c.bf16 %v421_v25, %v420_v24  ;;  %v419_v28 = vld [vmem:[%s1627_s11 + $0x18] sm:$0xff]  ;;  %v416_v30 = vld [vmem:[%s1627_s11] sm:$0xff]  ;;  %v417_v31 = vld [vmem:[%s1627_s11 + $0x8] sm:$0xff] }
  0x4c   : > { %1242 = vmatprep.mubr.bf16.mxu0 %v408_v18  ;;  %1250 = vmatprep.mubr.bf16.mxu1 %v412_v19  ;;  %v433_v29 = vpack.c.bf16 %v419_v28, %v418_v27  ;;  %v432_v32 = vpack.c.bf16 %v417_v31, %v416_v30  ;;  %v405_v33 = vld [vmem:[%s1639_s25 + $0x8] sm:$0xff]  ;;  %v407_v34 = vld [vmem:[%s1639_s25 + $0x18] sm:$0xff]  ;;  %v442_v41 = vld [vmem:[#allocation2 + $0x10] sm:$0xff] }
  0x4d   : > { %v410_v37 = vunpack.c.l.s8.bf16 %v405_v33  ;;  %v414_v38 = vunpack.c.l.s8.bf16 %v407_v34  ;;  %v411_v39 = vunpack.c.h.s8.bf16 %v405_v33  ;;  %v415_v40 = vunpack.c.h.s8.bf16 %v407_v34  ;;  %v450_v42 = vld [vmem:[#allocation2 + $0x50] sm:$0xff]  ;;  %v440_v45 = vld [vmem:[#allocation2] sm:$0xff]  ;;  %v443_v51 = vld [vmem:[#allocation2 + $0x18] sm:$0xff] }
  0x4e   : > { %1229 = vmatpush3.bf16.msra.mxu0 %v438_v10  ;;  %1267 = vmatpush3.bf16.msra.mxu1 %v438_v10  ;;  %v448_v46 = vld [vmem:[#allocation2 + $0x40] sm:$0xff]  ;;  %v451_v52 = vld [vmem:[#allocation2 + $0x58] sm:$0xff]  ;;  %v441_v57 = vld [vmem:[#allocation2 + $0x8] sm:$0xff] }
  0x4f   : > { %1230 = vmatprep.subr.bf16.mxu0 %v437_v13  ;;  %1260 = vmatprep.subr.bf16.mxu1 %v437_v13  ;;  %v449_v58 = vld [vmem:[#allocation2 + $0x48] sm:$0xff]  ;;  %v446_v63 = vld [vmem:[#allocation2 + $0x30] sm:$0xff]  ;;  %v444_v5 = vld [vmem:[#allocation2 + $0x20] sm:$0xff] }
  0x50   : > { %v454_v0 = vld [vmem:[#allocation2 + $0x70] sm:$0xff]  ;;  %v452_v6 = vld [vmem:[#allocation2 + $0x60] sm:$0xff]  ;;  %v447_v11 = vld [vmem:[#allocation2 + $0x38] sm:$0xff] }
  0x51   : > { %v455_v12 = vld [vmem:[#allocation2 + $0x78] sm:$0xff]  ;;  %v445_v17 = vld [vmem:[#allocation2 + $0x28] sm:$0xff] }
  0x52   : > { %1231 = vmatpush3.bf16.msra.mxu0 %v437_v13  ;;  %1268 = vmatpush3.bf16.msra.mxu1 %v437_v13  ;;  %v453_v18 = vld [vmem:[#allocation2 + $0x68] sm:$0xff] }
  0x53   : > { %1232 = vmatprep.subr.bf16.mxu0 %v436_v20  ;;  %1261 = vmatprep.subr.bf16.mxu1 %v436_v20 }
  0x56   : > { %1233 = vmatpush3.bf16.msra.mxu0 %v436_v20  ;;  %1269 = vmatpush3.bf16.msra.mxu1 %v436_v20 }
  0x57   : > { %1234 = vmatprep.subr.bf16.mxu0 %v435_v23  ;;  %1262 = vmatprep.subr.bf16.mxu1 %v435_v23 }
  0x5a   : > { %1235 = vmatpush3.bf16.msra.mxu0 %v435_v23  ;;  %1270 = vmatpush3.bf16.msra.mxu1 %v435_v23 }
  0x5b   : > { %1236 = vmatprep.subr.bf16.mxu0 %v434_v26  ;;  %1263 = vmatprep.subr.bf16.mxu1 %v434_v26 }
  0x5e   : > { %1237 = vmatpush3.bf16.msra.mxu0 %v434_v26  ;;  %1271 = vmatpush3.bf16.msra.mxu1 %v434_v26 }
  0x5f   : > { %1238 = vmatprep.subr.bf16.mxu0 %v433_v29  ;;  %1264 = vmatprep.subr.bf16.mxu1 %v433_v29 }
  0x62   : > { %1239 = vmatpush3.bf16.msra.mxu0 %v433_v29  ;;  %1272 = vmatpush3.bf16.msra.mxu1 %v433_v29 }
  0x63   : > { %1240 = vmatprep.subr.bf16.mxu0 %v432_v32  ;;  %1265 = vmatprep.subr.bf16.mxu1 %v432_v32 }
  0x66   : > { %1241 = vmatpush3.bf16.msra.mxu0 %v432_v32  ;;  %1273 = vmatpush3.bf16.msra.mxu1 %v432_v32 }
  0x69   : > { %1243 = vmatmul.mubr.bf16.vlgmr.msra.gmra.mxu0 %v409_v35  ;;  %1251 = vmatmul.mubr.bf16.vlgmr.msra.gmra.mxu1 %v413_v36 }
  0x6a   : > { %1246 = vmatprep.mubr.bf16.mxu0 %v410_v37  ;;  %1254 = vmatprep.mubr.bf16.mxu1 %v414_v38 }
  0x71   : > { %1247 = vmatmul.mubr.bf16.gmra.mxu0 %v411_v39  ;;  %1255 = vmatmul.mubr.bf16.gmra.mxu1 %v415_v40 }
 0x129   : > { %v1244_v43 = vpop.f32.mrf.mxu0  ;;  %v1252_v44 = vpop.f32.mrf.mxu1 }
 0x12a   : > { %v555_v47 = vadd.f32 %v1244_v43, %v442_v41  ;;  %v563_v48 = vadd.f32 %v1252_v44, %v450_v42 }
 0x12b   : > { %v490_v49 = vpop.f32.mrf.mxu0  ;;  %v522_v50 = vpop.f32.mrf.mxu1 }
 0x12c   : > { %572 = vst.msk [vmem:[#allocation2 + $0x10] sm:$0xff] %vm569_vm1, %v555_v47  ;;  %580 = vst.msk [vmem:[#allocation2 + $0x50] sm:$0xff] %vm569_vm1, %v563_v48  ;;  %v553_v53 = vadd.f32 %v490_v49, %v440_v45  ;;  %v561_v54 = vadd.f32 %v522_v50, %v448_v46 }
 0x12d   : > { %v1245_v55 = vpop.f32.mrf.mxu0  ;;  %v1253_v56 = vpop.f32.mrf.mxu1 }
 0x12e   : > { %570 = vst.msk [vmem:[#allocation2] sm:$0xff] %vm569_vm1, %v553_v53  ;;  %578 = vst.msk [vmem:[#allocation2 + $0x40] sm:$0xff] %vm569_vm1, %v561_v54  ;;  %v556_v59 = vadd.f32 %v1245_v55, %v443_v51  ;;  %v564_v60 = vadd.f32 %v1253_v56, %v451_v52 }
 0x12f   : > { %v493_v61 = vpop.f32.mrf.mxu0  ;;  %v525_v62 = vpop.f32.mrf.mxu1 }
 0x130   : > { %573 = vst.msk [vmem:[#allocation2 + $0x18] sm:$0xff] %vm569_vm1, %v556_v59  ;;  %581 = vst.msk [vmem:[#allocation2 + $0x58] sm:$0xff] %vm569_vm1, %v564_v60  ;;  %v554_v1 = vadd.f32 %v493_v61, %v441_v57  ;;  %v562_v2 = vadd.f32 %v525_v62, %v449_v58 }
 0x131   : > { %v1248_v3 = vpop.f32.mrf.mxu0  ;;  %v1256_v4 = vpop.f32.mrf.mxu1 }
 0x132   : > { %571 = vst.msk [vmem:[#allocation2 + $0x8] sm:$0xff] %vm569_vm1, %v554_v1  ;;  %579 = vst.msk [vmem:[#allocation2 + $0x48] sm:$0xff] %vm569_vm1, %v562_v2  ;;  %v559_v7 = vadd.f32 %v1248_v3, %v446_v63  ;;  %v567_v8 = vadd.f32 %v1256_v4, %v454_v0 }
 0x133   : > { %v506_v9 = vpop.f32.mrf.mxu0  ;;  %v538_v10 = vpop.f32.mrf.mxu1 }
 0x134   : > { %576 = vst.msk [vmem:[#allocation2 + $0x30] sm:$0xff] %vm569_vm1, %v559_v7  ;;  %584 = vst.msk [vmem:[#allocation2 + $0x70] sm:$0xff] %vm569_vm1, %v567_v8  ;;  %v557_v13 = vadd.f32 %v506_v9, %v444_v5  ;;  %v565_v14 = vadd.f32 %v538_v10, %v452_v6 }
 0x135   : > { %v1249_v15 = vpop.f32.mrf.mxu0  ;;  %v1257_v16 = vpop.f32.mrf.mxu1 }
 0x136   : > { %574 = vst.msk [vmem:[#allocation2 + $0x20] sm:$0xff] %vm569_vm1, %v557_v13  ;;  %582 = vst.msk [vmem:[#allocation2 + $0x60] sm:$0xff] %vm569_vm1, %v565_v14  ;;  %v560_v19 = vadd.f32 %v1249_v15, %v447_v11  ;;  %v568_v20 = vadd.f32 %v1257_v16, %v455_v12  ;;  %589 = sbr.rel (%p1121_p6) target bundleno = 508 (0x1fc), region = 90 }
 0x137   : > { %v509_v21 = vpop.f32.mrf.mxu0  ;;  %v541_v22 = vpop.f32.mrf.mxu1 }
 0x138   : > { %577 = vst.msk [vmem:[#allocation2 + $0x38] sm:$0xff] %vm569_vm1, %v560_v19  ;;  %585 = vst.msk [vmem:[#allocation2 + $0x78] sm:$0xff] %vm569_vm1, %v568_v20  ;;  %v558_v23 = vadd.f32 %v509_v21, %v445_v17  ;;  %v566_v24 = vadd.f32 %v541_v22, %v453_v18 }
 0x13a   : > { %575 = vst.msk [vmem:[#allocation2 + $0x28] sm:$0xff] %vm569_vm1, %v558_v23  ;;  %583 = vst.msk [vmem:[#allocation2 + $0x68] sm:$0xff] %vm569_vm1, %v566_v24 }
 0x13b   : > { %v592_v25 = vld [vmem:[#allocation2 + $0x10] sm:$0xff]  ;;  %v590_v27 = vld [vmem:[#allocation2] sm:$0xff]  ;;  %v1478_v28 = vmov 0   ;;  %v593_v31 = vld [vmem:[#allocation2 + $0x18] sm:$0xff] }
 0x13c   : > { %v608_v26 = vld [vmem:[%s1632_s24 + $0x10] sm:$0xff]  ;;  %1366 = vset.pattern.permute.xlu1 %v1478_v28  ;;  %1365 = vset.pattern.permute.xlu0 %v1478_v28  ;;  %v606_v30 = vld [vmem:[%s1632_s24] sm:$0xff]  ;;  %v609_v32 = vld [vmem:[%s1632_s24 + $0x18] sm:$0xff] }
 0x13d   : > { %v624_v29 = vmul.f32 %v608_v26, %v592_v25  ;;  %v622_v33 = vmul.f32 %v606_v30, %v590_v27  ;;  %v591_v34 = vld [vmem:[#allocation2 + $0x8] sm:$0xff]  ;;  %v625_v36 = vmul.f32 %v609_v32, %v593_v31  ;;  %v594_v40 = vld [vmem:[#allocation2 + $0x20] sm:$0xff]  ;;  %v613_v45 = vld [vmem:[%s1632_s24 + $0x38] sm:$0xff] }
 0x13e   : > { %v607_v35 = vld [vmem:[%s1632_s24 + $0x8] sm:$0xff]  ;;  %v610_v41 = vld [vmem:[%s1632_s24 + $0x20] sm:$0xff]  ;;  %v596_v46 = vld [vmem:[#allocation2 + $0x30] sm:$0xff] }
 0x13f   : > { %651 = vperm.xlu1 %1366, %v624_v29   ;;  %641 = vperm.xlu0 %1365, %v622_v33   ;;  %v623_v37 = vmul.f32 %v607_v35, %v591_v34  ;;  %v611_v39 = vld [vmem:[%s1632_s24 + $0x28] sm:$0xff]  ;;  %v626_v43 = vmul.f32 %v610_v41, %v594_v40  ;;  %v597_v44 = vld [vmem:[#allocation2 + $0x38] sm:$0xff]  ;;  %v612_v47 = vld [vmem:[%s1632_s24 + $0x30] sm:$0xff] }
 0x140   : > { %v629_v48 = vmul.f32 %v613_v45, %v597_v44  ;;  %v628_v49 = vmul.f32 %v612_v47, %v596_v46  ;;  %v599_v50 = vld [vmem:[#allocation2 + $0x48] sm:$0xff]  ;;  %v598_v52 = vld [vmem:[#allocation2 + $0x40] sm:$0xff]  ;;  %v601_v56 = vld [vmem:[#allocation2 + $0x58] sm:$0xff] }
 0x141   : > { %v595_v38 = vld [vmem:[#allocation2 + $0x28] sm:$0xff]  ;;  %v614_v53 = vld [vmem:[%s1632_s24 + $0x40] sm:$0xff]  ;;  %v617_v57 = vld [vmem:[%s1632_s24 + $0x58] sm:$0xff] }
 0x142   : > { %v627_v42 = vmul.f32 %v611_v39, %v595_v38  ;;  %v615_v51 = vld [vmem:[%s1632_s24 + $0x48] sm:$0xff]  ;;  %v630_v55 = vmul.f32 %v614_v53, %v598_v52  ;;  %v600_v58 = vld [vmem:[#allocation2 + $0x50] sm:$0xff]  ;;  %v633_v60 = vmul.f32 %v617_v57, %v601_v56  ;;  %v602_v0 = vld [vmem:[#allocation2 + $0x60] sm:$0xff] }
 0x143   : > { %656 = vperm.xlu1 %1366, %v625_v36   ;;  %646 = vperm.xlu0 %1365, %v623_v37   ;;  %v631_v54 = vmul.f32 %v615_v51, %v599_v50  ;;  %v616_v59 = vld [vmem:[%s1632_s24 + $0x50] sm:$0xff]  ;;  %v603_v62 = vld [vmem:[#allocation2 + $0x68] sm:$0xff]  ;;  %v618_v1 = vld [vmem:[%s1632_s24 + $0x60] sm:$0xff] }
 0x144   : > { %v632_v61 = vmul.f32 %v616_v59, %v600_v58  ;;  %v619_v63 = vld [vmem:[%s1632_s24 + $0x68] sm:$0xff]  ;;  %v634_v3 = vmul.f32 %v618_v1, %v602_v0  ;;  %v605_v4 = vld [vmem:[#allocation2 + $0x78] sm:$0xff]  ;;  %v604_v6 = vld [vmem:[#allocation2 + $0x70] sm:$0xff] }
 0x145   : > { %v635_v2 = vmul.f32 %v619_v63, %v603_v62  ;;  %v621_v5 = vld [vmem:[%s1632_s24 + $0x78] sm:$0xff]  ;;  %v620_v7 = vld [vmem:[%s1632_s24 + $0x70] sm:$0xff]  ;;  %v781_v10 = vld [vmem:[%s1637_s20 + $0x8] sm:$0xff] }
 0x146   : > { %v637_v8 = vmul.f32 %v621_v5, %v605_v4  ;;  %v636_v9 = vmul.f32 %v620_v7, %v604_v6  ;;  %v780_v11 = vld [vmem:[%s1637_s20] sm:$0xff]  ;;  %v783_v12 = vld [vmem:[%s1637_s20 + $0x18] sm:$0xff]  ;;  %v782_v13 = vld [vmem:[%s1637_s20 + $0x10] sm:$0xff] }
 0x147   : > { %666 = vperm.xlu1 %1366, %v627_v42   ;;  %661 = vperm.xlu0 %1365, %v626_v43   ;;  %v785_v14 = vld [vmem:[%s1637_s20 + $0x28] sm:$0xff]  ;;  %v784_v15 = vld [vmem:[%s1637_s20 + $0x20] sm:$0xff]  ;;  %v787_v16 = vld [vmem:[%s1637_s20 + $0x38] sm:$0xff] }
 0x148   : > { %v786_v17 = vld [vmem:[%s1637_s20 + $0x30] sm:$0xff]  ;;  %v789_v18 = vld [vmem:[%s1637_s20 + $0x48] sm:$0xff]  ;;  %v788_v19 = vld [vmem:[%s1637_s20 + $0x40] sm:$0xff] }
 0x149   : > { %v791_v20 = vld [vmem:[%s1637_s20 + $0x58] sm:$0xff]  ;;  %v790_v21 = vld [vmem:[%s1637_s20 + $0x50] sm:$0xff]  ;;  %v793_v22 = vld [vmem:[%s1637_s20 + $0x68] sm:$0xff] }
 0x14a   : > { %v792_v23 = vld [vmem:[%s1637_s20 + $0x60] sm:$0xff]  ;;  %v795_v24 = vld [vmem:[%s1637_s20 + $0x78] sm:$0xff]  ;;  %v794_v25 = vld [vmem:[%s1637_s20 + $0x70] sm:$0xff] }
 0x14b   : > { %676 = vperm.xlu1 %1366, %v629_v48   ;;  %671 = vperm.xlu0 %1365, %v628_v49   ;;  %v1732_v37 = vld [vmem:[%s1854_s4] ss:$0 sm:$0xff] }
 0x14c   : > { %v1739_v42 = vld [vmem:[%s1855_s5] ss:$0 sm:$0xff] }
 0x14f   : > { %686 = vperm.xlu1 %1366, %v631_v54   ;;  %681 = vperm.xlu0 %1365, %v630_v55  }
 0x153   : > { %696 = vperm.xlu1 %1366, %v633_v60   ;;  %691 = vperm.xlu0 %1365, %v632_v61  }
 0x157   : > { %706 = vperm.xlu1 %1366, %v635_v2   ;;  %701 = vperm.xlu0 %1365, %v634_v3  }
 0x15b   : > { %716 = vperm.xlu1 %1366, %v637_v8   ;;  %711 = vperm.xlu0 %1365, %v636_v9  }
 0x15f   : > { %803 = vperm.xlu1 %1366, %v781_v10   ;;  %798 = vperm.xlu0 %1365, %v780_v11  }
 0x163   : > { %813 = vperm.xlu1 %1366, %v783_v12   ;;  %808 = vperm.xlu0 %1365, %v782_v13  }
 0x167   : > { %823 = vperm.xlu1 %1366, %v785_v14   ;;  %818 = vperm.xlu0 %1365, %v784_v15  }
 0x16b   : > { %833 = vperm.xlu1 %1366, %v787_v16   ;;  %828 = vperm.xlu0 %1365, %v786_v17  }
 0x16f   : > { %843 = vperm.xlu1 %1366, %v789_v18   ;;  %838 = vperm.xlu0 %1365, %v788_v19  }
 0x173   : > { %853 = vperm.xlu1 %1366, %v791_v20   ;;  %848 = vperm.xlu0 %1365, %v790_v21  }
 0x177   : > { %863 = vperm.xlu1 %1366, %v793_v22   ;;  %858 = vperm.xlu0 %1365, %v792_v23  }
 0x17b   : > { %873 = vperm.xlu1 %1366, %v795_v24   ;;  %868 = vperm.xlu0 %1365, %v794_v25  }
 0x1ba   : > { %v652_v26 = vpop.permute.xlu1 %651  ;;  %v642_v27 = vpop.permute.xlu0 %641 }
 0x1bb   : > { %v725_v40 = vmul.f32 %v1732_v37, %v642_v27  ;;  %v727_v46 = vmul.f32 %v1732_v37, %v652_v26 }
 0x1bd   : > { %v748_v47 = vadd.f32 %v1739_v42, %v725_v40  ;;  %v750_v53 = vadd.f32 %v1739_v42, %v727_v46 }
 0x1be   : > { %v657_v28 = vpop.permute.xlu1 %656  ;;  %v647_v29 = vpop.permute.xlu0 %646 }
 0x1bf   : > { %v726_v39 = vmul.f32 %v1732_v37, %v647_v29  ;;  %v728_v44 = vmul.f32 %v1732_v37, %v657_v28  ;;  %v764_v56 = vmax.f32 %v748_v47, 0.0  ;;  %v766_v3 = vmax.f32 %v750_v53, 0.0 }
 0x1c1   : > { %v749_v45 = vadd.f32 %v1739_v42, %v726_v39  ;;  %v751_v50 = vadd.f32 %v1739_v42, %v728_v44 }
 0x1c2   : > { %v667_v30 = vpop.permute.xlu1 %666  ;;  %v662_v31 = vpop.permute.xlu0 %661 }
 0x1c3   : > { %v730_v51 = vmul.f32 %v1732_v37, %v667_v30  ;;  %v765_v52 = vmax.f32 %v749_v45, 0.0  ;;  %v729_v54 = vmul.f32 %v1732_v37, %v662_v31  ;;  %v767_v62 = vmax.f32 %v751_v50, 0.0 }
 0x1c5   : > { %v753_v60 = vadd.f32 %v1739_v42, %v730_v51  ;;  %v752_v63 = vadd.f32 %v1739_v42, %v729_v54 }
 0x1c6   : > { %v677_v32 = vpop.permute.xlu1 %676  ;;  %v672_v33 = vpop.permute.xlu0 %671 }
 0x1c7   : > { %v732_v61 = vmul.f32 %v1732_v37, %v677_v32  ;;  %v731_v0 = vmul.f32 %v1732_v37, %v672_v33  ;;  %v769_v9 = vmax.f32 %v753_v60, 0.0  ;;  %v768_v14 = vmax.f32 %v752_v63, 0.0 }
 0x1c9   : > { %v755_v7 = vadd.f32 %v1739_v42, %v732_v61  ;;  %v754_v10 = vadd.f32 %v1739_v42, %v731_v0 }
 0x1ca   : > { %v687_v34 = vpop.permute.xlu1 %686  ;;  %v682_v35 = vpop.permute.xlu0 %681 }
 0x1cb   : > { %v734_v8 = vmul.f32 %v1732_v37, %v687_v34  ;;  %v733_v11 = vmul.f32 %v1732_v37, %v682_v35  ;;  %v771_v20 = vmax.f32 %v755_v7, 0.0  ;;  %v770_v25 = vmax.f32 %v754_v10, 0.0 }
 0x1cd   : > { %v757_v18 = vadd.f32 %v1739_v42, %v734_v8  ;;  %v756_v21 = vadd.f32 %v1739_v42, %v733_v11 }
 0x1ce   : > { %v697_v36 = vpop.permute.xlu1 %696  ;;  %v692_v38 = vpop.permute.xlu0 %691 }
 0x1cf   : > { %v736_v19 = vmul.f32 %v1732_v37, %v697_v36  ;;  %v735_v22 = vmul.f32 %v1732_v37, %v692_v38  ;;  %v773_v31 = vmax.f32 %v757_v18, 0.0  ;;  %v772_v36 = vmax.f32 %v756_v21, 0.0 }
 0x1d1   : > { %v759_v29 = vadd.f32 %v1739_v42, %v736_v19  ;;  %v758_v32 = vadd.f32 %v1739_v42, %v735_v22 }
 0x1d2   : > { %v707_v41 = vpop.permute.xlu1 %706  ;;  %v702_v43 = vpop.permute.xlu0 %701 }
 0x1d3   : > { %v738_v30 = vmul.f32 %v1732_v37, %v707_v41  ;;  %v737_v33 = vmul.f32 %v1732_v37, %v702_v43  ;;  %v775_v46 = vmax.f32 %v759_v29, 0.0  ;;  %v774_v51 = vmax.f32 %v758_v32, 0.0 }
 0x1d5   : > { %v761_v44 = vadd.f32 %v1739_v42, %v738_v30  ;;  %v760_v41 = vadd.f32 %v1739_v42, %v737_v33 }
 0x1d6   : > { %v717_v48 = vpop.permute.xlu1 %716  ;;  %v1745_v49 = vpop.permute.xlu0 %711 }
 0x1d7   : > { %v740_v45 = vmul.f32 %v1732_v37, %v717_v48  ;;  %v739_v47 = vmul.f32 %v1732_v37, %v1745_v49 }
 0x1d9   : > { %v762_v48 = vadd.f32 %v1739_v42, %v739_v47 }
 0x1da   : > { %v804_v55 = vpop.permute.xlu1 %803  ;;  %v799_v58 = vpop.permute.xlu0 %798 }
 0x1db   : > { %v877_v57 = vmul.f32 %v804_v55, %v765_v52  ;;  %v876_v59 = vmul.f32 %v799_v58, %v764_v56  ;;  %v763_v55 = vadd.f32 %v1739_v42, %v740_v45  ;;  %v777_v56 = vmax.f32 %v761_v44, 0.0 }
 0x1dc   : > { %v778_v0 = vmax.f32 %v762_v48, 0.0 }
 0x1dd   : > { %v1166_v1 = vpack.c.bf16 %v877_v57, %v876_v59  ;;  %v776_v59 = vmax.f32 %v760_v41, 0.0  ;;  %v779_v61 = vmax.f32 %v763_v55, 0.0 }
 0x1de   : > { %v814_v2 = vpop.permute.xlu1 %813  ;;  %v809_v5 = vpop.permute.xlu0 %808 }
 0x1df   : > { %v879_v4 = vmul.f32 %v814_v2, %v767_v62  ;;  %1167 = vst [vmem:[%s1641_s19] sm:$0xff] %v1166_v1   ;;  %v878_v6 = vmul.f32 %v809_v5, %v766_v3 }
 0x1e1   : > { %v1171_v12 = vpack.c.bf16 %v879_v4, %v878_v6 }
 0x1e2   : > { %v824_v13 = vpop.permute.xlu1 %823  ;;  %v819_v16 = vpop.permute.xlu0 %818 }
 0x1e3   : > { %v881_v15 = vmul.f32 %v824_v13, %v769_v9  ;;  %1203 = vst [vmem:[%s1641_s19 + $0x8] sm:$0xff] %v1171_v12   ;;  %v880_v17 = vmul.f32 %v819_v16, %v768_v14 }
 0x1e5   : > { %v1176_v23 = vpack.c.bf16 %v881_v15, %v880_v17 }
 0x1e6   : > { %v834_v24 = vpop.permute.xlu1 %833  ;;  %v829_v27 = vpop.permute.xlu0 %828 }
 0x1e7   : > { %v883_v26 = vmul.f32 %v834_v24, %v771_v20  ;;  %1204 = vst [vmem:[%s1641_s19 + $0x10] sm:$0xff] %v1176_v23   ;;  %v882_v28 = vmul.f32 %v829_v27, %v770_v25 }
 0x1e9   : > { %v1181_v34 = vpack.c.bf16 %v883_v26, %v882_v28 }
 0x1ea   : > { %v844_v35 = vpop.permute.xlu1 %843  ;;  %v839_v39 = vpop.permute.xlu0 %838 }
 0x1eb   : > { %v885_v38 = vmul.f32 %v844_v35, %v773_v31  ;;  %1205 = vst [vmem:[%s1641_s19 + $0x18] sm:$0xff] %v1181_v34   ;;  %v884_v40 = vmul.f32 %v839_v39, %v772_v36 }
 0x1ed   : > { %v1186_v43 = vpack.c.bf16 %v885_v38, %v884_v40 }
 0x1ee   : > { %v854_v50 = vpop.permute.xlu1 %853  ;;  %v849_v53 = vpop.permute.xlu0 %848 }
 0x1ef   : > { %v887_v52 = vmul.f32 %v854_v50, %v775_v46  ;;  %1206 = vst [vmem:[%s1641_s19 + $0x20] sm:$0xff] %v1186_v43   ;;  %v886_v54 = vmul.f32 %v849_v53, %v774_v51 }
 0x1f1   : > { %v1191_v57 = vpack.c.bf16 %v887_v52, %v886_v54 }
 0x1f2   : > { %v864_v58 = vpop.permute.xlu1 %863  ;;  %v859_v37 = vpop.permute.xlu0 %858 }
 0x1f3   : > { %v889_v60 = vmul.f32 %v864_v58, %v777_v56  ;;  %1207 = vst [vmem:[%s1641_s19 + $0x28] sm:$0xff] %v1191_v57   ;;  %v888_v49 = vmul.f32 %v859_v37, %v776_v59 }
 0x1f5   : > { %v1196_v62 = vpack.c.bf16 %v889_v60, %v888_v49 }
 0x1f6   : > { %v874_v63 = vpop.permute.xlu1 %873  ;;  %v869_v2 = vpop.permute.xlu0 %868 }
 0x1f7   : > { %v891_v1 = vmul.f32 %v874_v63, %v779_v61  ;;  %1208 = vst [vmem:[%s1641_s19 + $0x30] sm:$0xff] %v1196_v62   ;;  %v890_v3 = vmul.f32 %v869_v2, %v778_v0 }
 0x1f9   : > { %v1201_v4 = vpack.c.bf16 %v891_v1, %v890_v3 }
 0x1fb   : > { %1209 = vst [vmem:[%s1641_s19 + $0x38] sm:$0xff] %v1201_v4  }
 0x1fc PF: > { %s1162_s29 = sshll.u32 %s1463_s27, 10  ;;  %s986_s7 = sshll.u32 %s1641_s19, 4  ;;  %s1789_s7 = int_to_ptr.vmem [resolvable:$true] %s986_s7 }
 0x1fd   : > { %s1786_s13 = scalar_lea.hbm %s1856_s6, %s1162_s29  ;;  %s1875_s8 = sand.u32 1, %s1443_s22  }
 0x1fe   : > { %s1793_s12 = scalar_lea.sflag [#allocation5], %s1875_s8  ;;  %s1367_s16 = scalar_lea.vmem %s1789_s7, 1024 }
 0x1ff   : > { %p1368_p8 = scmp.ne.s32.totalorder %s1789_s7, %s1367_s16  ;;  %s1479_s27 = smov [#allocation4]  }
 0x200   : > { %s1371_s17 = sshll.u32 %s1479_s27, 4  ;;  %s1372_s17 = int_to_ptr.vmem [resolvable:$false] %s1371_s17 }
 0x201   : > { %p1369_p9 = pnand %p1368_p8, %p1589_p7  ;;  %s1373_s14 = scalar_lea.vmem %s1372_s17, 2048 }
 0x202   : > { %p1374_p11 = scmp.lt.s32.totalorder %s1789_s7, %s1372_s17  ;;  %p1375_p13 = scmp.lt.s32.totalorder %s1373_s14, %s1367_s16 }
 0x203   : > { %p1370_p10 = pneg %p1369_p9 }
 0x204   : > { %p1376_p0 = por %p1375_p13, %p1374_p11 }
 0x206   : > { %p1377_p1 = pnand %p1376_p0, %p1370_p10 }
 0x208   : > { %1380 = shalt.err (!%p1377_p1)
}
 0x209   : > { %s1381_s19 = scalar_lea.hbm %s1786_s13, 1024  ;;  %s1385_s9 = scalar_lea.hbm %s1856_s6, 2048 }
 0x20a   : > { %p1382_p2 = scmp.ne.s32.totalorder %s1786_s13, %s1381_s19  ;;  %p1386_p5 = scmp.lt.s32.totalorder %s1786_s13, %s1856_s6 }
 0x20b   : > { %p1387_p6 = scmp.lt.s32.totalorder %s1385_s9, %s1381_s19 }
 0x20c   : > { %p1383_p3 = pnand %p1382_p2, %p1589_p7 }
 0x20d   : > { %p1388_p8 = por %p1387_p6, %p1386_p5 }
 0x20e   : > { %p1384_p4 = pneg %p1383_p3 }
 0x210   : > { %p1389_p9 = pnand %p1388_p8, %p1384_p4 }
 0x212   : > { %1392 = shalt.err (!%p1389_p9)
}
 0x213   : > { %s1480_s26 = smov 64   ;;  %s1481_s28 = smov 4  }
 0x214   : > { %1274 = dma.vmem_to_hbm [thread:$0]  (%p1589_p7), %s1789_s7, 1024, %s1786_s13, %s1793_s12, %s1480_s26, %s1480_s26, %s1481_s28  }
 0x215 PF: > { %p1280_p10 = scmp.ge.s32.totalorder %s1475_s30, 2  ;;  %s1001_s29 = sand.u32 1, %s1439_s21  }
 0x216   : > { %s1002_s20 = scalar_lea.sflag [#allocation5], %s1001_s29 }
 0x217   : > { %p1277_p11 = pnand %p1280_p10, %p1597_p12 }
 0x219   : > { %p1278_p13 = pneg %p1277_p11 }
 0x21b   : > { %1434 = dma.done.wait (%p1278_p13), %s1002_s20, 1024  }
 0x21c   : > { %1436 = vsyncadd (%p1278_p13), %s1002_s20, 4294966272  ;;  %s19_s30 = sadd.s32 1, %s1475_s30   ;;  %s1876_s10 = sld [smem:[#allocation12_spill]] }
 0x21d   : > { %p16_p0 = scmp.ge.s32.totalorder %s19_s30, 6   ;;  %s1877_s24 = sld [smem:[#allocation7_spill]] }
 0x21e   : > { %s1878_s25 = sld [smem:[#allocation13_spill]]  ;;  %s1883_s21 = smov %s1443_s22 }
 0x21f   : > { %s1879_s26 = sld [smem:[#allocation8_spill]]  ;;  %s1884_s22 = smov %s1447_s23 }
 0x220   : > { %s1880_s27 = sld [smem:[#allocation9_spill]]  ;;  %18 = sbr.rel (!%p16_p0) target bundleno = 8 (0x8), region = 139 }
 0x221   : > { %s1881_s28 = sld [smem:[#allocation10_spill]] }
 0x222   : > { %s1882_s29 = sld [smem:[#allocation11_spill]]  ;;  %s1885_s23 = smov %s1876_s10 }
 0x225   :  { %1007 = vsyncpa [#allocation5], 1 }
 0x226   :  { %1009 = vsyncpa [#allocation5 + $0x1], 1 }

</bundles_post_ra>
